<compile_context>
chip_gen: v5e
topology: v5e:2x2
jax: 0.10.0
libtpu: 0.0.40
codegen_flags: <defaults>
</compile_context>

<pallas_src>
import functools

import jax
import jax.numpy as jnp
from jax.experimental import pallas as pl
from jax.experimental.pallas import tpu as pltpu

_MIB = 1024 * 1024


def _round_up(n, m):
    return (n + m - 1) // m * m


def _tpu_vmem_capacity_bytes():
    try:
        return int(pltpu.get_tpu_info().vmem_capacity_bytes)
    except Exception:
        return 64 * _MIB          # conservative fallback (v7x has the smallest VMEM)


def _ln_stats(v, n_true, eps):
    """Mean / inverse-stddev over the last axis, counting only the first `n_true`
    columns. Padded columns of `v` are guaranteed to be zero by the wrapper."""
    dm_p = v.shape[-1]
    mu = jnp.sum(v, axis=-1, keepdims=True) * (1.0 / n_true)
    if dm_p != n_true:
        mask = jax.lax.broadcasted_iota(jnp.int32, (1, dm_p), 1) < n_true
        diff = jnp.where(mask, v - mu, 0.0)
    else:
        diff = v - mu
    var = jnp.sum(diff * diff, axis=-1, keepdims=True) * (1.0 / n_true)
    return mu, jax.lax.rsqrt(var + eps)


def _ffn_kernel(*refs, pre_layernorm: bool, cache_v: bool, eps: float, n_true: int):
    if pre_layernorm:
        if cache_v:
            (x_ref, w1_ref, b1_ref, w2_ref, b2_ref,
             o_ref, acc_ref, v_ref) = refs
        else:
            x_ref, w1_ref, b1_ref, w2_ref, b2_ref, o_ref, acc_ref = refs
            v_ref = None
        g_ref = beta_ref = None
    else:
        (x_ref, w1_ref, b1_ref, w2_ref, b2_ref, g_ref, beta_ref,
         o_ref, acc_ref) = refs
        v_ref = None

    k = pl.program_id(1)
    nk = pl.num_programs(1)
    mm_dtype = w1_ref.dtype

    @pl.when(k == 0)
    def _init():
        acc_ref[...] = jnp.zeros_like(acc_ref)
        if cache_v:
            # Pre-LN: normalize once per row tile, reuse for every d_ff chunk.
            xf = x_ref[...].astype(jnp.float32)
            mu, inv = _ln_stats(xf, n_true, eps)
            v_ref[...] = ((xf - mu) * inv).astype(mm_dtype)

    if pre_layernorm:
        if cache_v:
            v = v_ref[...]
        else:
            xf = x_ref[...].astype(jnp.float32)
            mu, inv = _ln_stats(xf, n_true, eps)
            v = ((xf - mu) * inv).astype(mm_dtype)
    else:
        v = x_ref[...].astype(mm_dtype)

    # First matmul on the current d_ff chunk; bias + ReLU on the f32 MXU result.
    h = jnp.dot(v, w1_ref[...], preferred_element_type=jnp.float32)
    b1_chunk = b1_ref[pl.ds(k, 1), :].astype(jnp.float32)   # resident b1, chunk k
    h = jnp.maximum(h + b1_chunk, 0.0)
    # Second matmul back to d_model; accumulate partial products in f32.
    acc_ref[...] += jnp.dot(h.astype(w2_ref.dtype), w2_ref[...],
                            preferred_element_type=jnp.float32)

    @pl.when(k == nk - 1)
    def _finalize():
        y = (acc_ref[...] + b2_ref[...].astype(jnp.float32)
             + x_ref[...].astype(jnp.float32))
        if pre_layernorm:
            out = y
        else:
            mu, inv = _ln_stats(y, n_true, eps)
            out = ((y - mu) * inv * g_ref[...].astype(jnp.float32)
                   + beta_ref[...].astype(jnp.float32))
        o_ref[...] = out.astype(o_ref.dtype)


def poswise_ffn(x, w1, b1, w2, b2, gamma, beta, *,
                pre_layernorm=False, eps=1e-5,
                tile_rows=None, max_tile_dff=None, vmem_limit_bytes=None):
    """x: (B, S, d_model) -> (B, S, d_model). Eval-mode PoswiseFeedForwardNet."""
    B, S, d_model = x.shape
    d_ff = w1.shape[1]
    rows = B * S
    out_dtype = x.dtype

    # ---- generation-aware VMEM budget & tile defaults -----------------------
    phys = _tpu_vmem_capacity_bytes()
    if vmem_limit_bytes is None:
        # ~104 MiB on v5e/v6e (128 MiB physical), ~56 MiB on v7x (64 MiB physical).
        vmem_limit_bytes = min(phys - 8 * _MIB, phys * 3 // 4 + 8 * _MIB)
    if tile_rows is None:
        tile_rows = 512 if phys >= 96 * _MIB else 256
    usable = int(vmem_limit_bytes * 0.9)     # headroom for internal scratch

    dm_p = _round_up(d_model, 128)           # lane-dense stores / full MXU panels

    # ---- host-side one-time prep: fold gamma/beta into W1/b1 for pre-LN -----
    if pre_layernorm:
        # LN(x) @ W1 + b1 == ((x-mu)*inv) @ (gamma[:,None]*W1) + (beta @ W1 + b1)
        w1f = w1.astype(jnp.float32)
        b1 = (b1.astype(jnp.float32)
              + beta.astype(jnp.float32) @ w1f).astype(b1.dtype)
        w1 = (w1f * gamma.astype(jnp.float32)[:, None]).astype(w1.dtype)

    xb = x.dtype.itemsize
    ob = jnp.dtype(out_dtype).itemsize
    w1b = w1.dtype.itemsize
    w2b = w2.dtype.itemsize
    b1b = b1.dtype.itemsize

    def vmem_usage(tm_, tk_, dffp_):
        use = 2 * tm_ * dm_p * (xb + ob)      # x / out tiles, double-buffered
        use += tm_ * dm_p * 4                 # f32 accumulator scratch
        if pre_layernorm:
            use += tm_ * dm_p * w1b           # cached normalized activations
        use += 2 * dm_p * tk_ * w1b           # W1 chunk (x2 buffers)
        use += 2 * tk_ * dm_p * w2b           # W2 chunk (x2 buffers)
        use += 2 * dffp_ * b1b                # resident b1
        use += 8 * dm_p * 4                   # b2 / gamma / beta
        return use

    # ---- row tiling ----------------------------------------------------------
    tm = min(_round_up(tile_rows, 8), _round_up(rows, 8))

    # ---- d_ff tiling ---------------------------------------------------------
    d_ff_p = _round_up(d_ff, 128)
    cap_user = None if max_tile_dff is None else _round_up(max_tile_dff, 128)
    tk = None
    # Prefer fully-resident weights (nk == 1): W1/W2 DMA'd exactly once, reused
    # across every row tile -> pure streaming of x / out from HBM.
    if (cap_user is None or d_ff_p <= cap_user) and \
            vmem_usage(tm, d_ff_p, d_ff_p) <= usable:
        tk = d_ff_p
    if tk is None:
        cap = cap_user if cap_user is not None else (1024 if phys >= 96 * _MIB else 512)
        while cap > 128 and vmem_usage(tm, cap, _round_up(d_ff, cap)) > usable:
            cap -= 128
        while vmem_usage(tm, cap, _round_up(d_ff, cap)) > usable and tm > 64:
            tm = _round_up(max(64, tm // 2), 8)
        # Largest 128-multiple divisor of d_ff_p that is <= cap; never fall back
        # to a tiny tk -- pad d_ff up to a multiple of cap instead (zero W1
        # columns / b1 entries / W2 rows contribute exactly 0 through the ReLU).
        best, c = 0, cap
        while c >= 128:
            if d_ff_p % c == 0:
                best = c
                break
            c -= 128
        if best >= 256:
            tk = best
        else:
            tk = cap
            d_ff_p = _round_up(d_ff, cap)
    nk = d_ff_p // tk

    # ---- megacore: with resident weights, splitting the row axis is free (they
    # are DMA'd once either way) and lets v7x's two TensorCores share the rows.
    if nk == 1 and rows >= 16 and _round_up(rows, tm) // tm < 2:
        tm = _round_up((rows + 1) // 2, 8)

    rows_p = _round_up(rows, tm)
    n_row_tiles = rows_p // tm

    # ---- padding (all zero-padding is exact through ReLU / residual / LN) ----
    x2d = x.reshape(rows, d_model)
    if dm_p != d_model:
        pad = dm_p - d_model
        x2d = jnp.pad(x2d, ((0, 0), (0, pad)))
        w1 = jnp.pad(w1, ((0, pad), (0, 0)))
        w2 = jnp.pad(w2, ((0, 0), (0, pad)))
        b2 = jnp.pad(b2, ((0, pad),))
        gamma = jnp.pad(gamma, ((0, pad),))
        beta = jnp.pad(beta, ((0, pad),))
    if d_ff_p != d_ff:
        pad = d_ff_p - d_ff
        w1 = jnp.pad(w1, ((0, 0), (0, pad)))
        b1 = jnp.pad(b1, ((0, pad),))
        w2 = jnp.pad(w2, ((0, pad), (0, 0)))
    if rows_p != rows:
        x2d = jnp.pad(x2d, ((0, rows_p - rows), (0, 0)))

    b1_2d = b1.reshape(nk, tk)            # resident; kernel slices chunk k
    b2_2d = b2.reshape(1, dm_p)
    g_2d = gamma.reshape(1, dm_p)
    beta_2d = beta.reshape(1, dm_p)

    cache_v = pre_layernorm and nk > 1
    kernel = functools.partial(_ffn_kernel, pre_layernorm=pre_layernorm,
                               cache_v=cache_v, eps=eps, n_true=d_model)

    in_specs = [
        pl.BlockSpec((tm, dm_p), lambda i, k: (i, 0)),       # x tile
        pl.BlockSpec((dm_p, tk), lambda i, k: (0, k)),       # W1 chunk
        pl.BlockSpec((nk, tk), lambda i, k: (0, 0)),         # b1 (resident)
        pl.BlockSpec((tk, dm_p), lambda i, k: (k, 0)),       # W2 chunk
        pl.BlockSpec((1, dm_p), lambda i, k: (0, 0)),        # b2
    ]
    operands = [x2d, w1, b1_2d, w2, b2_2d]
    if not pre_layernorm:                                     # gamma/beta only for post-LN
        in_specs += [pl.BlockSpec((1, dm_p), lambda i, k: (0, 0)),
                     pl.BlockSpec((1, dm_p), lambda i, k: (0, 0))]
        operands += [g_2d, beta_2d]

    scratch_shapes = [pltpu.VMEM((tm, dm_p), jnp.float32)]    # f32 accumulator
    if cache_v:
        scratch_shapes.append(pltpu.VMEM((tm, dm_p), w1.dtype))

    # Advisory cost hint (weights are re-streamed once per row tile when nk > 1).
    weight_passes = 1 if nk == 1 else n_row_tiles
    flops = 4 * rows_p * dm_p * d_ff_p
    bytes_accessed = (
        rows_p * dm_p * (xb + ob)
        + weight_passes * (w1.size * w1b + w2.size * w2b)
        + b1_2d.size * b1b + b2_2d.size * b2_2d.dtype.itemsize
        + (0 if pre_layernorm else (g_2d.size + beta_2d.size) * 4))

    out2d = pl.pallas_call(
        kernel,
        out_shape=jax.ShapeDtypeStruct((rows_p, dm_p), out_dtype),
        grid_spec=pltpu.PrefetchScalarGridSpec(
            num_scalar_prefetch=0,
            grid=(n_row_tiles, nk),
            in_specs=in_specs,
            out_specs=pl.BlockSpec((tm, dm_p), lambda i, k: (i, 0)),
            scratch_shapes=scratch_shapes),
        compiler_params=pltpu.CompilerParams(
            dimension_semantics=("parallel", "arbitrary"),
            vmem_limit_bytes=int(vmem_limit_bytes)),
        cost_estimate=pl.CostEstimate(
            flops=flops, transcendentals=rows_p, bytes_accessed=bytes_accessed),
    )(*operands)

    if rows_p != rows or dm_p != d_model:
        out2d = out2d[:rows, :d_model]
    return out2d.reshape(B, S, d_model)


def _ref_forward(x, w1, b1, w2, b2, gamma, beta, pre_layernorm=False, eps=1e-5):
    def ln(v):
        mu = v.mean(-1, keepdims=True)
        var = ((v - mu) ** 2).mean(-1, keepdims=True)
        return (v - mu) / jnp.sqrt(var + eps) * gamma + beta

    def ffn(v):
        return jnp.maximum(v @ w1 + b1, 0.0) @ w2 + b2

    if pre_layernorm:
        return x + ffn(ln(x))
    return ln(x + ffn(x))


if __name__ == "__main__":
    key = jax.random.PRNGKey(0)

    # ---- Test 1: post-LN, f32, small d_model -> exercises d_model padding,
    #              masked LayerNorm, resident weights, row-tile split ---------
    B, S, d_model, d_ff = 2, 8, 32, 64
    kx, k1, kb1, k2, kb2, kg, kb = jax.random.split(key, 7)
    x = jax.random.normal(kx, (B, S, d_model), dtype=jnp.float32)
    lim1 = 1.0 / (d_model ** 0.5)
    lim2 = 1.0 / (d_ff ** 0.5)
    w1 = jax.random.uniform(k1, (d_model, d_ff), jnp.float32, -lim1, lim1)
    b1 = jax.random.uniform(kb1, (d_ff,), jnp.float32, -lim1, lim1)
    w2 = jax.random.uniform(k2, (d_ff, d_model), jnp.float32, -lim2, lim2)
    b2 = jax.random.uniform(kb2, (d_model,), jnp.float32, -lim2, lim2)
    gamma = jnp.ones((d_model,), jnp.float32)
    beta = jnp.zeros((d_model,), jnp.float32)

    out = jax.block_until_ready(
        poswise_ffn(x, w1, b1, w2, b2, gamma, beta, pre_layernorm=False))
    ref = _ref_forward(x, w1, b1, w2, b2, gamma, beta, pre_layernorm=False)
    assert out.shape == (B, S, d_model)
    assert jnp.allclose(out, ref, atol=1e-5, rtol=1e-5), "post-LN mismatch"

    # ---- Test 2: pre-LN, non-trivial affine (gamma/beta folded host-side) ---
    gamma2 = 1.0 + 0.1 * jax.random.normal(kg, (d_model,), jnp.float32)
    beta2 = 0.1 * jax.random.normal(kb, (d_model,), jnp.float32)
    out2 = jax.block_until_ready(
        poswise_ffn(x, w1, b1, w2, b2, gamma2, beta2, pre_layernorm=True))
    ref2 = _ref_forward(x, w1, b1, w2, b2, gamma2, beta2, pre_layernorm=True)
    assert jnp.allclose(out2, ref2, atol=1e-4, rtol=1e-4), "pre-LN mismatch"

    # ---- Test 3: bf16, multiple row tiles (row padding) + chunked d_ff (nk>1,
    #              f32 accumulator path) --------------------------------------
    B3, S3, dm3, dff3 = 2, 24, 128, 1024
    k3 = jax.random.split(key, 6)
    x3 = jax.random.normal(k3[0], (B3, S3, dm3), dtype=jnp.float32)
    l1 = 1.0 / (dm3 ** 0.5)
    l2 = 1.0 / (dff3 ** 0.5)
    w1_3 = jax.random.uniform(k3[1], (dm3, dff3), jnp.float32, -l1, l1)
    b1_3 = jax.random.uniform(k3[2], (dff3,), jnp.float32, -l1, l1)
    w2_3 = jax.random.uniform(k3[3], (dff3, dm3), jnp.float32, -l2, l2)
    b2_3 = jax.random.uniform(k3[4], (dm3,), jnp.float32, -l2, l2)
    g3 = jnp.ones((dm3,), jnp.float32)
    be3 = jnp.zeros((dm3,), jnp.float32)

    out3 = jax.block_until_ready(poswise_ffn(
        x3.astype(jnp.bfloat16), w1_3.astype(jnp.bfloat16),
        b1_3.astype(jnp.bfloat16), w2_3.astype(jnp.bfloat16),
        b2_3.astype(jnp.bfloat16), g3, be3,
        pre_layernorm=False, tile_rows=32, max_tile_dff=512))
    ref3 = _ref_forward(x3, w1_3, b1_3, w2_3, b2_3, g3, be3, pre_layernorm=False)
    assert out3.dtype == jnp.bfloat16
    assert jnp.allclose(out3.astype(jnp.float32), ref3, atol=5e-2, rtol=5e-2), \
        "bf16 mismatch"

    # ---- Test 4: pre-LN with chunked d_ff (cached normalized activations) and
    #              d_ff padded up to a tile multiple (640 -> 1024) ------------
    B4, S4, dm4, dff4 = 2, 8, 128, 640
    k4 = jax.random.split(jax.random.PRNGKey(1), 6)
    x4 = jax.random.normal(k4[0], (B4, S4, dm4), dtype=jnp.float32)
    l1 = 1.0 / (dm4 ** 0.5)
    l2 = 1.0 / (dff4 ** 0.5)
    w1_4 = jax.random.uniform(k4[1], (dm4, dff4), jnp.float32, -l1, l1)
    b1_4 = jax.random.uniform(k4[2], (dff4,), jnp.float32, -l1, l1)
    w2_4 = jax.random.uniform(k4[3], (dff4, dm4), jnp.float32, -l2, l2)
    b2_4 = jax.random.uniform(k4[4], (dm4,), jnp.float32, -l2, l2)
    g4 = 1.0 + 0.1 * jax.random.normal(k4[5], (dm4,), jnp.float32)
    be4 = 0.05 * jax.random.normal(k4[0], (dm4,), jnp.float32)

    out4 = jax.block_until_ready(poswise_ffn(
        x4, w1_4, b1_4, w2_4, b2_4, g4, be4,
        pre_layernorm=True, max_tile_dff=512))
    ref4 = _ref_forward(x4, w1_4, b1_4, w2_4, b2_4, g4, be4, pre_layernorm=True)
    assert jnp.allclose(out4, ref4, atol=1e-4, rtol=1e-4), "pre-LN chunked mismatch"

    print("KERNEL_OK")
</pallas_src>

<mosaic_0001>
module attributes {stable_mosaic.version = 11 : i64} {
  func.func @_ffn_kernel(%arg0: i32, %arg1: i32, %arg2: memref<8x128xf32, #tpu.memory_space<vmem>>, %arg3: memref<128x128xf32, #tpu.memory_space<vmem>>, %arg4: memref<1x128xf32, #tpu.memory_space<vmem>>, %arg5: memref<128x128xf32, #tpu.memory_space<vmem>>, %arg6: memref<1x128xf32, #tpu.memory_space<vmem>>, %arg7: memref<1x128xf32, #tpu.memory_space<vmem>>, %arg8: memref<1x128xf32, #tpu.memory_space<vmem>>, %arg9: memref<8x128xf32, #tpu.memory_space<vmem>>, %arg10: memref<8x128xf32, #tpu.memory_space<vmem>>) attributes {dimension_semantics = [#tpu.dimension_semantics<parallel>, #tpu.dimension_semantics<arbitrary>], iteration_bounds = array<i64: 2, 1>, scalar_prefetch = 0 : i64, scratch_operands = 1 : i64, tpu.core_type = #tpu.core_type<tc>, window_params = [{transform_indices = @transform_0, window_bounds = array<i64: 8, 128>}, {transform_indices = @transform_1, window_bounds = array<i64: 128, 128>}, {pipeline_mode = #tpu.pipeline_mode<synchronous>, transform_indices = @transform_2, window_bounds = array<i64: 1, 128>}, {transform_indices = @transform_3, window_bounds = array<i64: 128, 128>}, {pipeline_mode = #tpu.pipeline_mode<synchronous>, transform_indices = @transform_4, window_bounds = array<i64: 1, 128>}, {pipeline_mode = #tpu.pipeline_mode<synchronous>, transform_indices = @transform_5, window_bounds = array<i64: 1, 128>}, {pipeline_mode = #tpu.pipeline_mode<synchronous>, transform_indices = @transform_6, window_bounds = array<i64: 1, 128>}, {transform_indices = @transform_7, window_bounds = array<i64: 8, 128>}]} {
    %c0_i32 = arith.constant 0 : i32
    %0 = arith.cmpi eq, %arg1, %c0_i32 : i32
    %1 = arith.extui %0 : i1 to i32
    %c0_i32_0 = arith.constant 0 : i32
    %2 = arith.cmpi ne, %1, %c0_i32_0 : i32
    scf.if %2 {
      %cst_15 = arith.constant 0.000000e+00 : f32
      %20 = vector.broadcast %cst_15 : f32 to vector<8x128xf32>
      %c0_16 = arith.constant 0 : index
      %c0_17 = arith.constant 0 : index
      %21 = vector.load %arg10[%c0_16, %c0_17] : memref<8x128xf32, #tpu.memory_space<vmem>>, vector<8x128xf32>
      tpu.vector_store %arg10[%c0_16, %c0_17], %20 {strides = array<i32>} : memref<8x128xf32, #tpu.memory_space<vmem>>, vector<8x128xf32>,
    } else {
    }
    %c0 = arith.constant 0 : index
    %c0_1 = arith.constant 0 : index
    %3 = vector.load %arg2[%c0, %c0_1] : memref<8x128xf32, #tpu.memory_space<vmem>>, vector<8x128xf32>
    %c0_2 = arith.constant 0 : index
    %c0_3 = arith.constant 0 : index
    %4 = vector.load %arg3[%c0_2, %c0_3] : memref<128x128xf32, #tpu.memory_space<vmem>>, vector<128x128xf32>
    %cst = arith.constant dense<0.000000e+00> : vector<8x128xf32>
    %5 = tpu.matmul %3, %4, %cst {dimension_numbers = #tpu.dot_dimension_numbers<[1], [0], [0], [1], [0, 0, 1, 1], [], []>} : vector<8x128xf32>, vector<128x128xf32>, vector<8x128xf32> -> vector<8x128xf32>
    %6 = arith.index_cast %arg1 : i32 to index
    %c0_4 = arith.constant 0 : index
    %7 = vector.load %arg4[%6, %c0_4] : memref<1x128xf32, #tpu.memory_space<vmem>>, vector<1x128xf32>
    %8 = vector.broadcast %7 : vector<1x128xf32> to vector<8x128xf32>
    %9 = arith.addf %5, %8 : vector<8x128xf32>
    %cst_5 = arith.constant 0.000000e+00 : f32
    %10 = vector.broadcast %cst_5 : f32 to vector<8x128xf32>
    %11 = arith.maximumf %9, %10 : vector<8x128xf32>
    %c0_6 = arith.constant 0 : index
    %c0_7 = arith.constant 0 : index
    %12 = vector.load %arg10[%c0_6, %c0_7] : memref<8x128xf32, #tpu.memory_space<vmem>>, vector<8x128xf32>
    %c0_8 = arith.constant 0 : index
    %c0_9 = arith.constant 0 : index
    %13 = vector.load %arg5[%c0_8, %c0_9] : memref<128x128xf32, #tpu.memory_space<vmem>>, vector<128x128xf32>
    %cst_10 = arith.constant dense<0.000000e+00> : vector<8x128xf32>
    %14 = tpu.matmul %11, %13, %cst_10 {dimension_numbers = #tpu.dot_dimension_numbers<[1], [0], [0], [1], [0, 0, 1, 1], [], []>} : vector<8x128xf32>, vector<128x128xf32>, vector<8x128xf32> -> vector<8x128xf32>
    %15 = arith.addf %12, %14 : vector<8x128xf32>
    %c0_11 = arith.constant 0 : index
    %c0_12 = arith.constant 0 : index
    %16 = vector.load %arg10[%c0_11, %c0_12] : memref<8x128xf32, #tpu.memory_space<vmem>>, vector<8x128xf32>
    tpu.vector_store %arg10[%c0_11, %c0_12], %15 {strides = array<i32>} : memref<8x128xf32, #tpu.memory_space<vmem>>, vector<8x128xf32>,
    %c0_i32_13 = arith.constant 0 : i32
    %17 = arith.cmpi eq, %arg1, %c0_i32_13 : i32
    %18 = arith.extui %17 : i1 to i32
    %c0_i32_14 = arith.constant 0 : i32
    %19 = arith.cmpi ne, %18, %c0_i32_14 : i32
    scf.if %19 {
      %c0_15 = arith.constant 0 : index
      %c0_16 = arith.constant 0 : index
      %20 = vector.load %arg10[%c0_15, %c0_16] : memref<8x128xf32, #tpu.memory_space<vmem>>, vector<8x128xf32>
      %c0_17 = arith.constant 0 : index
      %c0_18 = arith.constant 0 : index
      %21 = vector.load %arg6[%c0_17, %c0_18] : memref<1x128xf32, #tpu.memory_space<vmem>>, vector<1x128xf32>
      %22 = vector.broadcast %21 : vector<1x128xf32> to vector<8x128xf32>
      %23 = arith.addf %20, %22 : vector<8x128xf32>
      %c0_19 = arith.constant 0 : index
      %c0_20 = arith.constant 0 : index
      %24 = vector.load %arg2[%c0_19, %c0_20] : memref<8x128xf32, #tpu.memory_space<vmem>>, vector<8x128xf32>
      %25 = arith.addf %23, %24 : vector<8x128xf32>
      %cst_21 = arith.constant dense<0.000000e+00> : vector<8xf32>
      %26 = vector.multi_reduction <add>, %25, %cst_21 [1] : vector<8x128xf32> to vector<8xf32>
      %27 = vector.shape_cast %26 : vector<8xf32> to vector<8x1xf32>
      %cst_22 = arith.constant 3.125000e-02 : f32
      %28 = vector.broadcast %cst_22 : f32 to vector<8x1xf32>
      %29 = arith.mulf %27, %28 : vector<8x1xf32>
      %30 = tpu.iota {dimensions = array<i32: 1>} : vector<1x128xi32>
      %c32_i32 = arith.constant 32 : i32
      %31 = vector.broadcast %c32_i32 : i32 to vector<1x128xi32>
      %32 = arith.cmpi slt, %30, %31 : vector<1x128xi32>
      %33 = vector.broadcast %29 : vector<8x1xf32> to vector<8x128xf32>
      %34 = arith.subf %25, %33 : vector<8x128xf32>
      %cst_23 = arith.constant 0.000000e+00 : f32
      %35 = vector.shape_cast %32 : vector<1x128xi1> to vector<1x128xi1>
      %36 = vector.broadcast %35 : vector<1x128xi1> to vector<8x128xi1>
      %37 = vector.broadcast %cst_23 : f32 to vector<8x128xf32>
      %38 = arith.select %36, %34, %37 : vector<8x128xi1>, vector<8x128xf32>
      %39 = arith.mulf %38, %38 : vector<8x128xf32>
      %cst_24 = arith.constant dense<0.000000e+00> : vector<8xf32>
      %40 = vector.multi_reduction <add>, %39, %cst_24 [1] : vector<8x128xf32> to vector<8xf32>
      %41 = vector.shape_cast %40 : vector<8xf32> to vector<8x1xf32>
      %cst_25 = arith.constant 3.125000e-02 : f32
      %42 = vector.broadcast %cst_25 : f32 to vector<8x1xf32>
      %43 = arith.mulf %41, %42 : vector<8x1xf32>
      %cst_26 = arith.constant 9.99999974E-6 : f32
      %44 = vector.broadcast %cst_26 : f32 to vector<8x1xf32>
      %45 = arith.addf %43, %44 : vector<8x1xf32>
      %46 = math.rsqrt %45 : vector<8x1xf32>
      %47 = vector.broadcast %29 : vector<8x1xf32> to vector<8x128xf32>
      %48 = arith.subf %25, %47 : vector<8x128xf32>
      %49 = vector.broadcast %46 : vector<8x1xf32> to vector<8x128xf32>
      %50 = arith.mulf %48, %49 : vector<8x128xf32>
      %c0_27 = arith.constant 0 : index
      %c0_28 = arith.constant 0 : index
      %51 = vector.load %arg7[%c0_27, %c0_28] : memref<1x128xf32, #tpu.memory_space<vmem>>, vector<1x128xf32>
      %52 = vector.broadcast %51 : vector<1x128xf32> to vector<8x128xf32>
      %53 = arith.mulf %50, %52 : vector<8x128xf32>
      %c0_29 = arith.constant 0 : index
      %c0_30 = arith.constant 0 : index
      %54 = vector.load %arg8[%c0_29, %c0_30] : memref<1x128xf32, #tpu.memory_space<vmem>>, vector<1x128xf32>
      %55 = vector.broadcast %54 : vector<1x128xf32> to vector<8x128xf32>
      %56 = arith.addf %53, %55 : vector<8x128xf32>
      %c0_31 = arith.constant 0 : index
      %c0_32 = arith.constant 0 : index
      %57 = vector.load %arg9[%c0_31, %c0_32] : memref<8x128xf32, #tpu.memory_space<vmem>>, vector<8x128xf32>
      tpu.vector_store %arg9[%c0_31, %c0_32], %56 {strides = array<i32>} : memref<8x128xf32, #tpu.memory_space<vmem>>, vector<8x128xf32>,
    } else {
    }
    return
  }
  func.func @transform_0(%arg0: i32, %arg1: i32) -> (i32, i32) {
    %c0_i32 = arith.constant 0 : i32
    %c0_i32_0 = arith.constant 0 : i32
    return %arg0, %c0_i32 : i32, i32
  }
  func.func @transform_1(%arg0: i32, %arg1: i32) -> (i32, i32) {
    %c0_i32 = arith.constant 0 : i32
    %c0_i32_0 = arith.constant 0 : i32
    return %c0_i32, %arg1 : i32, i32
  }
  func.func @transform_2(%arg0: i32, %arg1: i32) -> (i32, i32) {
    %c0_i32 = arith.constant 0 : i32
    %c0_i32_0 = arith.constant 0 : i32
    %c0_i32_1 = arith.constant 0 : i32
    return %c0_i32, %c0_i32_0 : i32, i32
  }
  func.func @transform_3(%arg0: i32, %arg1: i32) -> (i32, i32) {
    %c0_i32 = arith.constant 0 : i32
    %c0_i32_0 = arith.constant 0 : i32
    return %arg1, %c0_i32 : i32, i32
  }
  func.func @transform_4(%arg0: i32, %arg1: i32) -> (i32, i32) {
    %c0_i32 = arith.constant 0 : i32
    %c0_i32_0 = arith.constant 0 : i32
    %c0_i32_1 = arith.constant 0 : i32
    return %c0_i32, %c0_i32_0 : i32, i32
  }
  func.func @transform_5(%arg0: i32, %arg1: i32) -> (i32, i32) {
    %c0_i32 = arith.constant 0 : i32
    %c0_i32_0 = arith.constant 0 : i32
    %c0_i32_1 = arith.constant 0 : i32
    return %c0_i32, %c0_i32_0 : i32, i32
  }
  func.func @transform_6(%arg0: i32, %arg1: i32) -> (i32, i32) {
    %c0_i32 = arith.constant 0 : i32
    %c0_i32_0 = arith.constant 0 : i32
    %c0_i32_1 = arith.constant 0 : i32
    return %c0_i32, %c0_i32_0 : i32, i32
  }
  func.func @transform_7(%arg0: i32, %arg1: i32) -> (i32, i32) {
    %c0_i32 = arith.constant 0 : i32
    %c0_i32_0 = arith.constant 0 : i32
    return %arg0, %c0_i32 : i32, i32
  }
}

</mosaic_0001>

<bundles_post_ra>
// kernel: tpu_custom_call.1
= control target key start
LH: loop header
LB: loop body
LE: loop exit
PB: predicated region body
PF: predicated region fallthrough
CT: control target
= control target key end

     0   :  { %s1103_s0 = inlined_call_operand.hbm [shape: f32[16,128], index: 0, kind: input, shape index: {}]   ;;  %s1104_s1 = inlined_call_operand.hbm [shape: f32[128,128], index: 1, kind: input, shape index: {}]   ;;  %s1105_s2 = inlined_call_operand.vmem [shape: f32[1,128], index: 2, kind: input, shape index: {}]   ;;  %s1106_s3 = inlined_call_operand.hbm [shape: f32[128,128], index: 3, kind: input, shape index: {}]   ;;  %s1107_s4 = inlined_call_operand.vmem [shape: f32[1,128], index: 4, kind: input, shape index: {}]   ;;  %s1108_s5 = inlined_call_operand.vmem [shape: f32[1,128], index: 5, kind: input, shape index: {}]   ;;  %s1109_s6 = inlined_call_operand.vmem [shape: f32[1,128], index: 6, kind: input, shape index: {}]   ;;  %s1110_s7 = inlined_call_operand.hbm [shape: f32[16,128], index: 7, kind: output, shape index: {}]  }
   0x1   :  { %1111 = sst [smem:[#allocation13_spill]] %s1104_s1 }
   0x2   :  { %12 = vsyncpa [#allocation4], 0 }
   0x3   :  { %14 = vsyncpa [#allocation4 + $0x1], 0 }
   0x4   :  { %15 = vsyncpa [#allocation7], 0 }
   0x5   :  { %16 = vsyncpa [#allocation5], 0 }
   0x6   :  { %18 = vsyncpa [#allocation5 + $0x1], 0  ;;  %s940_s24 = smov 0   ;;  %s942_s25 = smov 0  }
   0x7   :  { %s944_s26 = smov 0   ;;  %s946_s27 = smov 0  }
   0x8   :  { %s948_s28 = smov 0   ;;  %s950_s29 = smov 0  }
   0x9 LB: > { %s610_s30 = sadd.s32 4294967295, %s894_s29   ;;  %p612_p0 = scmp.ge.s32.totalorder %s894_s29, 1  ;;  %s894_s29 = sphi %s950_s29, %s24_s29   ;;  %s890_s28 = sphi %s948_s28, %s1122_s28   ;;  %s886_s27 = sphi %s946_s27, %s1121_s27   ;;  %s882_s26 = sphi %s944_s26, %s1120_s26   ;;  %s878_s25 = sphi %s942_s25, %s1119_s25   ;;  %s874_s24 = sphi %s940_s24, %s1118_s24  }
   0xa   : > { %p974_p1 = scmp.eq.s32.totalorder %s610_s30, 0  ;;  %p229_p2 = scmp.lt.s32.totalorder %s894_s29, 3 }
   0xb   : > { %s1113_s1 = sld [smem:[#allocation13_spill]]  ;;  %s896_s13 = smov [#allocation6]  }
   0xc   : > { %p982_p3 = pnand %p612_p0, %p229_p2  ;;  %s244_s14 = sshll.u32 %s896_s13, 4  ;;  %s245_s14 = int_to_ptr.vmem [resolvable:$true] %s244_s14 }
   0xd   : > { %p615_p6 = scmp.ge.s32.totalorder %s894_s29, 2  ;;  %s262_s17 = sshll.u32 %s1106_s3, 4  ;;  %s263_s17 = int_to_ptr.hbm [resolvable:$true] %s262_s17 }
   0xe   : > { %p639_p4 = pneg %p982_p3  ;;  %s897_s18 = smov 128  }
   0xf   : > { %s898_s19 = smov 8   ;;  %s899_s20 = smov [#allocation8]  }
  0x10   : > { %p640_p5 = pnand %p639_p4, %p974_p1  ;;  %s264_s21 = sshll.u32 %s899_s20, 4  ;;  %s265_s21 = int_to_ptr.vmem [resolvable:$true] %s264_s21 }
  0x11   : > { %s242_s11 = sshll.u32 %s1113_s1, 4  ;;  %s36_s22 = sadd.s32 1, %s890_s28  ;;  %s243_s11 = int_to_ptr.hbm [resolvable:$true] %s242_s11 }
  0x12   : > { %642 = dma.hbm_to_vmem [thread:$0]  (!%p640_p5), %s243_s11, 2048, %s245_s14, [#allocation7], %s897_s18, %s897_s18, %s898_s19  }
  0x13   : > { %645 = dma.hbm_to_vmem [thread:$0]  (!%p640_p5), %s263_s17, 2048, %s265_s21, [#allocation7], %s897_s18, %s897_s18, %s898_s19  }
  0x14   : > { %s611_s23 = sadd.s32 4294967294, %s894_s29   ;;  %p38_p7 = scmp.ge.s32.totalorder %s36_s22, 2 }
  0x15   : > { %s43_s9 = sadd.s32 1, %s882_s26  ;;  %p50_p8 = scmp.ne.s32.totalorder %s882_s26, %s878_s25 }
  0x16   : > { %s1124_s22 = smov (%p38_p7, %s36_s22), 0  ;;  %p51_p9 = scmp.eq.s32.totalorder %s894_s29, 0 }
  0x17   : > { %p56_p10 = scmp.ne.s32.totalorder %s878_s25, %s874_s24  ;;  %s40_s10 = ssub.s32 %s890_s28, %s1124_s22 }
  0x18   : > { %p216_p11 = scmp.eq.s32.totalorder %s610_s30, 1  ;;  %p41_p12 = scmp.eq.s32.totalorder %s40_s10, 0 }
  0x19   : > { %p1010_p13 = por %p974_p1, %p56_p10  ;;  %p222_p2 = scmp.eq.s32.totalorder %s611_s23, 1 }
  0x1a   : > { %p1014_p0 = por %p216_p11, %p50_p8  ;;  %p52_p4 = por %p51_p9, %p50_p8 }
  0x1b   : > { %s1019_s14 = scalar_select %p41_p12, %s882_s26, %s43_s9  }
  0x1c   : > { %p1021_p5 = por %p222_p2, %p56_p10  ;;  %s287_s16 = sand.u32 1, %s882_s26  }
  0x1d   : > { %s617_s30 = sshll.u32 %s890_s28, 3  ;;  %p656_p7 = scmp.lt.s32.totalorder %s894_s29, 2 }
  0x1e   : > { %s616_s17 = sshll.u32 %s287_s16, 3  ;;  %s295_s20 = scalar_lea.hbm %s1103_s0, %s617_s30 }
  0x1f   : > { %s297_s21 = sshll.u32 %s295_s20, 4  ;;  %s291_s10 = scalar_lea.vmem [#allocation3], %s616_s17  ;;  %s298_s21 = int_to_ptr.hbm [resolvable:$true] %s297_s21 }
  0x20   : > { %s299_s1 = sshll.u32 %s291_s10, 4  ;;  %p647_p11 = pnand %p656_p7, %p52_p4  ;;  %s300_s1 = int_to_ptr.vmem [resolvable:$true] %s299_s1 }
  0x21   : > { %s288_s23 = scalar_lea.sflag [#allocation4], %s287_s16  ;;  %308 = sbr.rel (%p982_p3) target bundleno = 603 (0x25b), region = 48 }
  0x22   : > { %649 = dma.hbm_to_vmem [thread:$0]  (!%p647_p11), %s298_s21, 128, %s300_s1, %s288_s23  }
  0x23   : > { %s1034_s9 = sand.u32 (!%p982_p3), 1, %s878_s25  }
  0x24   : > { %s619_s18 = sshll.u32 (!%p982_p3), %s1034_s9, 3  ;;  %s311_s30 = scalar_lea.sflag (!%p982_p3), [#allocation4], %s1034_s9 }
  0x25   : > { %s1040_s17 = scalar_lea.vmem (!%p982_p3), [#allocation3], %s619_s18 }
  0x26   : > { %861 = dma.done.wait (%p1010_p13), %s311_s30, 128  }
  0x27   : > { %863 = vsyncadd (%p1010_p13), %s311_s30, 4294967168 }
  0x28   : > { %865 = dma.done.wait (%p974_p1), [#allocation7], 4096  }
  0x29   : > { %867 = vsyncadd (%p974_p1), [#allocation7], 4294963200  ;;  %v378_v0 = vld [vmem:[#allocation6 + $0x78] sm:$0xff]  ;;  %v377_v1 = vld [vmem:[#allocation6 + $0x70] sm:$0xff]  ;;  %v458_v41 = vlaneseq  ;;  %s624_s16 = sshll.u32 %s886_s27, 3  ;;  %s355_s27 = scalar_lea.vmem [#allocation9], %s619_s18 }
  0x2a   : > { %384 = vmatpush.msra.mxu0 %v378_v0  ;;  %v376_v2 = vld [vmem:[#allocation6 + $0x68] sm:$0xff]  ;;  %v375_v3 = vld [vmem:[#allocation6 + $0x60] sm:$0xff]  ;;  %v421_v4 = vld [vmem:[#allocation8 + $0x78] sm:$0xff]  ;;  %s503_s23 = scalar_lea.hbm %s1110_s7, %s624_s16  ;;  %s505_s1 = sshll.u32 %s355_s27, 4  ;;  %s506_s1 = int_to_ptr.vmem [resolvable:$true] %s505_s1 }
  0x2b   : > { %v374_v5 = vld [vmem:[#allocation6 + $0x58] sm:$0xff]  ;;  %422 = vmatpush.msra.mxu1 %v421_v4  ;;  %v420_v6 = vld [vmem:[#allocation8 + $0x70] sm:$0xff]  ;;  %v419_v7 = vld [vmem:[#allocation8 + $0x68] sm:$0xff]  ;;  %v459_v42 = vand.u32 127, %v458_v41  ;;  %s507_s8 = sshll.u32 %s503_s23, 4  ;;  %s493_s12 = scalar_lea.sflag [#allocation5], %s1034_s9  ;;  %s508_s8 = int_to_ptr.hbm [resolvable:$true] %s507_s8 }
  0x2c   : > { %385 = vmatpush.msra.mxu0 %v377_v1  ;;  %v373_v8 = vld [vmem:[#allocation6 + $0x50] sm:$0xff]  ;;  %v418_v9 = vld [vmem:[#allocation8 + $0x60] sm:$0xff]  ;;  %v372_v10 = vld [vmem:[#allocation6 + $0x48] sm:$0xff]  ;;  %s822_s11 = sshra.s32 %s508_s8, 4  ;;  %s828_s21 = scalar_lea.hbm %s1110_s7, 16  ;;  %s823_s11 = int_to_ptr.hbm [resolvable:$true] %s822_s11 }
  0x2d   : > { %423 = vmatpush.msra.mxu1 %v420_v6  ;;  %v417_v11 = vld [vmem:[#allocation8 + $0x58] sm:$0xff]  ;;  %v371_v12 = vld [vmem:[#allocation6 + $0x40] sm:$0xff]  ;;  %v416_v13 = vld [vmem:[#allocation8 + $0x50] sm:$0xff]  ;;  %vm460_vm0 = vcmp.lt.s32.totalorder %v459_v42, 32  ;;  %s824_s16 = scalar_lea.hbm %s823_s11, 8  ;;  %p829_p9 = scmp.lt.s32.totalorder %s823_s11, %s1110_s7 }
  0x2e   : > { %386 = vmatpush.msra.mxu0 %v376_v2  ;;  %v370_v14 = vld [vmem:[#allocation6 + $0x38] sm:$0xff]  ;;  %v415_v15 = vld [vmem:[#allocation8 + $0x48] sm:$0xff]  ;;  %v369_v16 = vld [vmem:[#allocation6 + $0x30] sm:$0xff]  ;;  %p825_p1 = scmp.ne.s32.totalorder %s823_s11, %s824_s16  ;;  %p830_p10 = scmp.lt.s32.totalorder %s828_s21, %s824_s16 }
  0x2f   : > { %424 = vmatpush.msra.mxu1 %v419_v7  ;;  %v414_v17 = vld [vmem:[#allocation8 + $0x40] sm:$0xff]  ;;  %v368_v18 = vld [vmem:[#allocation6 + $0x28] sm:$0xff]  ;;  %v413_v19 = vld [vmem:[#allocation8 + $0x38] sm:$0xff] }
  0x30   : > { %387 = vmatpush.msra.mxu0 %v375_v3  ;;  %v367_v20 = vld [vmem:[#allocation6 + $0x20] sm:$0xff]  ;;  %v412_v21 = vld [vmem:[#allocation8 + $0x30] sm:$0xff]  ;;  %v366_v22 = vld [vmem:[#allocation6 + $0x18] sm:$0xff]  ;;  %p826_p3 = pnand %p825_p1, %p1014_p0  ;;  %p831_p12 = por %p830_p10, %p829_p9 }
  0x31   : > { %425 = vmatpush.msra.mxu1 %v418_v9  ;;  %v411_v23 = vld [vmem:[#allocation8 + $0x28] sm:$0xff]  ;;  %v365_v24 = vld [vmem:[#allocation6 + $0x10] sm:$0xff]  ;;  %v410_v25 = vld [vmem:[#allocation8 + $0x20] sm:$0xff] }
  0x32   : > { %388 = vmatpush.msra.mxu0 %v374_v5  ;;  %v364_v26 = vld [vmem:[#allocation6 + $0x8] sm:$0xff]  ;;  %v409_v27 = vld [vmem:[#allocation8 + $0x18] sm:$0xff]  ;;  %v363_v28 = vld [vmem:[#allocation6] sm:$0xff]  ;;  %p827_p8 = pneg %p826_p3 }
  0x33   : > { %426 = vmatpush.msra.mxu1 %v417_v11  ;;  %v362_v29 = vld [vmem:[%s1040_s17] sm:$0xff]  ;;  %v407_v31 = vld [vmem:[#allocation8 + $0x8] sm:$0xff]  ;;  %v406_v32 = vld [vmem:[#allocation8] sm:$0xff] }
  0x34   : > { %389 = vmatpush.msra.mxu0 %v373_v8  ;;  %v408_v30 = vld [vmem:[#allocation8 + $0x10] sm:$0xff]  ;;  %p832_p13 = pnand %p831_p12, %p827_p8 }
  0x35   : > { %427 = vmatpush.msra.mxu1 %v416_v13  ;;  %v712_v33 = vld [vmem:[%s1105_s2] ss:$0 sm:$0xff] }
  0x36   : > { %390 = vmatpush.msra.mxu0 %v372_v10  ;;  %v713_v37 = vld [vmem:[%s1107_s4] ss:$0 sm:$0xff] }
  0x37   : > { %428 = vmatpush.msra.mxu1 %v415_v15  ;;  %v714_v57 = vld [vmem:[%s1108_s5] ss:$0 sm:$0xff] }
  0x38   : > { %391 = vmatpush.msra.mxu0 %v371_v12  ;;  %v715_v60 = vld [vmem:[%s1109_s6] ss:$0 sm:$0xff] }
  0x39   : > { %429 = vmatpush.msra.mxu1 %v414_v17 }
  0x3a   : > { %392 = vmatpush.msra.mxu0 %v370_v14 }
  0x3b   : > { %430 = vmatpush.msra.mxu1 %v413_v19 }
  0x3c   : > { %393 = vmatpush.msra.mxu0 %v369_v16 }
  0x3d   : > { %431 = vmatpush.msra.mxu1 %v412_v21 }
  0x3e   : > { %394 = vmatpush.msra.mxu0 %v368_v18 }
  0x3f   : > { %432 = vmatpush.msra.mxu1 %v411_v23 }
  0x40   : > { %395 = vmatpush.msra.mxu0 %v367_v20 }
  0x41   : > { %433 = vmatpush.msra.mxu1 %v410_v25 }
  0x42   : > { %396 = vmatpush.msra.mxu0 %v366_v22 }
  0x43   : > { %434 = vmatpush.msra.mxu1 %v409_v27 }
  0x44   : > { %397 = vmatpush.msra.mxu0 %v365_v24 }
  0x45   : > { %435 = vmatpush.msra.mxu1 %v408_v30 }
  0x46   : > { %398 = vmatpush.msra.mxu0 %v364_v26 }
  0x47   : > { %436 = vmatpush.msra.mxu1 %v407_v31 }
  0x48   : > { %399 = vmatpush.msra.mxu0 %v363_v28 }
  0x49   : > { %400 = vmatmul.f32.vlgmr.msra.gmra.mxu0 %v362_v29  ;;  %437 = vmatpush.msra.mxu1 %v406_v32 }
  0xc6   : > { %v401_v34 = vpop.f32.mrf.mxu0 }
  0xc7   : > { %v402_v35 = vadd.f32 %v712_v33, %v401_v34 }
  0xc9   : > { %v404_v36 = vmax.f32 %v402_v35, 0.0 }
  0xcb   : > { %438 = vmatmul.f32.vlgmr.msra.gmra.mxu1 %v404_v36 }
 0x148   : > { %v439_v38 = vpop.f32.mrf.mxu1 }
 0x149   : > { %v452_v39 = vadd.f32 %v713_v37, %v439_v38 }
 0x14b   : > { %v454_v40 = vadd.f32 %v452_v39, %v362_v29 }
 0x14d   : > { %455 = vadd.xlane.f32.xlu0 %v454_v40 }
 0x1c0   : > { %v456_v43 = vpop.xlane.xlu0 %455 }
 0x1c1   : > { %v457_v44 = vmul.f32 0.03125, %v456_v43 }
 0x1c3   : > { %v461_v45 = vsub.f32 %v454_v40, %v457_v44 }
 0x1c5   : > { %v464_v46 = vsel %vm460_vm0, %v461_v45, 0.0 }
 0x1c6   : > { %v465_v47 = vmul.f32 %v464_v46, %v464_v46 }
 0x1c8   : > { %466 = vadd.xlane.f32.xlu0 %v465_v47 }
 0x23b   : > { %v467_v48 = vpop.xlane.xlu0 %466 }
 0x23c   : > { %v468_v49 = vmul.f32 0.03125, %v467_v48 }
 0x23e   : > { %v469_v50 = vadd.f32 1e-05, %v468_v49 }
 0x240   : > { %716 = vrsqrt.f32 %v469_v50  ;;  %vm476_vm2 = vweird.f32 %v469_v50 }
 0x246   : > { %v717_v51 = vpop.eup %716 }
 0x247   : > { %v471_v52 = vmul.f32 %v717_v51, %v469_v50  ;;  %vm477_vm1 = vweird.f32 %v717_v51 }
 0x248   : > { %vm478_vm3 = vmor %vm476_vm2, %vm477_vm1 }
 0x249   : > { %v472_v53 = vmul.f32 %v717_v51, %v471_v52 }
 0x24b   : > { %v473_v54 = vmul.f32 0.5, %v472_v53 }
 0x24d   : > { %v474_v55 = vsub.f32 1.5, %v473_v54 }
 0x24f   : > { %v475_v56 = vmul.f32 %v717_v51, %v474_v55 }
 0x251   : > { %v479_v58 = vsel %vm478_vm3, %v717_v51, %v475_v56 }
 0x252   : > { %v480_v59 = vmul.f32 %v479_v58, %v461_v45 }
 0x254   : > { %v485_v61 = vmul.f32 %v714_v57, %v480_v59 }
 0x256   : > { %v490_v62 = vadd.f32 %v715_v60, %v485_v61 }
 0x258   : > { %491 = vst [vmem:[%s355_s27] sm:$0xff] %v490_v62 }
 0x259   : > { %835 = shalt.err (!%p832_p13)
}
 0x25a   : > { %637 = dma.vmem_to_hbm [thread:$0]  (%p1014_p0), %s506_s1, 128, %s508_s8, %s493_s12  }
 0x25b PF: > { %s519_s9 = sand.u32 1, %s874_s24   ;;  %p651_p2 = pnand %p615_p6, %p1021_p5 }
 0x25c   : > { %s520_s23 = scalar_lea.sflag [#allocation5], %s519_s9 }
 0x25d   : > { %p652_p4 = pneg %p651_p2 }
 0x25f   : > { %869 = dma.done.wait (%p652_p4), %s520_s23, 128  }
 0x260   : > { %871 = vsyncadd (%p652_p4), %s520_s23, 4294967168  ;;  %s24_s29 = sadd.s32 1, %s894_s29   ;;  %s1118_s24 = smov %s878_s25 }
 0x261   : > { %p21_p7 = scmp.ge.s32.totalorder %s24_s29, 4   ;;  %s1119_s25 = smov %s882_s26 }
 0x262   : > { %s1120_s26 = smov %s1019_s14  ;;  %s1121_s27 = smov %s890_s28 }
 0x263   : > { %s1122_s28 = smov %s1124_s22  ;;  %23 = sbr.rel (!%p21_p7) target bundleno = 9 (0x9), region = 112 }
 0x268   :  { %526 = vsyncpa [#allocation4], 1 }
 0x269   :  { %528 = vsyncpa [#allocation4 + $0x1], 1 }
 0x26a   :  { %529 = vsyncpa [#allocation7], 1 }
 0x26b   :  { %530 = vsyncpa [#allocation5], 1 }
 0x26c   :  { %532 = vsyncpa [#allocation5 + $0x1], 1 }

</bundles_post_ra>
